<compile_context>
chip_gen: v7x
topology: tpu7x:2x2x1
jax: 0.10.0
libtpu: 0.0.40
codegen_flags: <defaults>
</compile_context>

<pallas_src>
import jax
import jax.numpy as jnp
from jax.experimental import pallas as pl
from jax.experimental.pallas import tpu as pltpu


def _patchconv_kernel(w_ref, shift_ref, a_ref, o_ref):
    # w_ref:     (Cout, K)        f32  — BN scale folded in, resident across the grid
    # shift_ref: (Cout, 1)        f32  — folded BN shift (beta - mean*scale)
    # a_ref:     (K, BLOCK_M)     bf16 — transposed patch-matrix tile (patches on lanes)
    # o_ref:     (Cout, BLOCK_M)  bf16 (default) — lane-dense output tile
    a = a_ref[...].astype(jnp.float32)
    y = jnp.dot(w_ref[...], a, preferred_element_type=jnp.float32)
    y = y + shift_ref[...]                                  # per-channel affine shift
    o_ref[...] = jnp.where(y >= 0.0, y, 0.2 * y).astype(o_ref.dtype)   # LeakyReLU(0.2)


def _pick_block_m(length, n_parallel_other, tile_m):
    """Lane-tile size: must be a multiple of 128 or the full extent ((8,128) rule).

    Prefers an exact divisor of `length` (no padded tail tile) and guarantees at
    least 2 tiles when there is no other parallel grid axis (v7x megacore)."""
    cap = max(128, (int(tile_m) // 128) * 128)
    if length <= 256:
        return length                                  # tiny problem: one full tile
    min_tiles = 1 if n_parallel_other >= 2 else 2      # keep both v7x TCs busy
    best = None
    d = 128
    while d <= min(length, cap):
        if length % d == 0 and (length // d) >= min_tiles:
            best = d
        d += 128
    if best is not None:
        return best                                    # exact divisor, no masked tail
    if length <= cap and min_tiles == 1:
        return length                                  # full extent fits in one tile
    # Fallback: ~even split rounded up to 128 lanes (last tile store is masked).
    bm = ((length + min_tiles - 1) // min_tiles + 127) // 128 * 128
    return max(128, min(cap, bm))


def patchconv_forward(x, weight, gamma, beta, running_mean, running_var,
                      patch_size=(4, 4), eps=1e-5, tile_m=4096,
                      compute_dtype=jnp.bfloat16, out_dtype=jnp.bfloat16):
    """x: (N, C, H, W) float32 (NCHW, matching PyTorch). Returns NCHW `out_dtype`."""
    N, C, H, W = x.shape
    kh, kw = patch_size
    assert H % kh == 0 and W % kw == 0, "patchconv expects H, W divisible by patch"
    oh, ow = H // kh, W // kw
    cout = weight.shape[0]
    K = C * kh * kw
    M = oh * ow                                  # patches per image

    # ---- fold BatchNorm (eval) into the conv weight + per-channel shift -----
    # TODO(synk): training-mode BatchNorm (batch statistics) is not implemented.
    scale = gamma / jnp.sqrt(running_var + eps)                       # (Cout,)
    shift = (beta - running_mean * scale).reshape(cout, 1).astype(jnp.float32)
    w_scaled = weight.reshape(cout, K).astype(jnp.float32) * scale[:, None]   # stays f32

    # ---- transposed patch matrix, patch dim on lanes -------------------------
    # For M < 128 fold the batch into the lane axis (lane-dense stores); otherwise
    # keep (N, K, M) so the (N, Cout, M) result reshapes to NCHW for free.
    # TODO(synk): a fully in-kernel patch relayout (reading NCHW x directly) needs
    # lane-crossing reshapes in Mosaic; instead the operand is marked fusible so XLA
    # can fold this transpose into the kernel's input DMA (allow_input_fusion below).
    fold_batch = M < 128
    xr = x.reshape(N, C, oh, kh, ow, kw)
    if fold_batch:
        a_t = xr.transpose(1, 3, 5, 0, 2, 4).reshape(1, K, N * M).astype(compute_dtype)
        nb, m_eff = 1, N * M
    else:
        a_t = xr.transpose(0, 1, 3, 5, 2, 4).reshape(N, K, M).astype(compute_dtype)
        nb, m_eff = N, M

    block_m = _pick_block_m(m_eff, nb, tile_m)
    num_m = pl.cdiv(m_eff, block_m)

    cost = pl.CostEstimate(
        flops=int(2 * N * M * K * cout),
        transcendentals=0,
        bytes_accessed=int(a_t.size * a_t.dtype.itemsize
                           + w_scaled.size * 4 + shift.size * 4
                           + nb * cout * m_eff * jnp.dtype(out_dtype).itemsize),
    )

    out = pl.pallas_call(
        _patchconv_kernel,
        out_shape=jax.ShapeDtypeStruct((nb, cout, m_eff), out_dtype),
        grid=(nb, num_m),
        in_specs=[
            pl.BlockSpec((cout, K), lambda n, m: (0, 0)),               # weight (resident)
            pl.BlockSpec((cout, 1), lambda n, m: (0, 0)),               # BN shift (resident)
            pl.BlockSpec((None, K, block_m), lambda n, m: (n, 0, m)),   # A_T tile (streamed)
        ],
        out_specs=pl.BlockSpec((None, cout, block_m), lambda n, m: (n, 0, m)),
        compiler_params=pltpu.CompilerParams(
            dimension_semantics=("parallel", "parallel"),
            vmem_limit_bytes=32 * 1024 * 1024,
            allow_input_fusion=[False, False, True],    # let XLA fuse the A_T producer
        ),
        cost_estimate=cost,
    )(w_scaled, shift, a_t)

    if fold_batch:
        # (Cout, N*M) -> (N, Cout, oh, ow): tiny transpose, handled by XLA.
        return out.reshape(cout, N, oh, ow).transpose(1, 0, 2, 3)
    return out.reshape(N, cout, oh, ow)            # free reshape, no transpose


def _reference(x, weight, gamma, beta, running_mean, running_var, patch, eps=1e-5):
    kh, kw = patch
    y = jax.lax.conv_general_dilated(
        x, weight, window_strides=(kh, kw), padding="VALID",
        dimension_numbers=("NCHW", "OIHW", "NCHW"))
    scale = gamma / jnp.sqrt(running_var + eps)
    shift = beta - running_mean * scale
    y = y * scale[None, :, None, None] + shift[None, :, None, None]
    return jnp.where(y >= 0, y, 0.2 * y)


if __name__ == "__main__":
    # Module defaults: patch_size=(4,4), in_dims=3, out_dims=16.
    key = jax.random.PRNGKey(0)
    kx, kw_, kg, kb, km, kv, kx2 = jax.random.split(key, 7)

    cout, C, kh, kw = 16, 3, 4, 4
    weight = 0.1 * jax.random.normal(kw_, (cout, C, kh, kw), dtype=jnp.float32)
    gamma = 1.0 + 0.05 * jax.random.normal(kg, (cout,), dtype=jnp.float32)
    beta = 0.05 * jax.random.normal(kb, (cout,), dtype=jnp.float32)
    running_mean = 0.05 * jax.random.normal(km, (cout,), dtype=jnp.float32)
    running_var = jnp.abs(1.0 + 0.05 * jax.random.normal(kv, (cout,), dtype=jnp.float32))

    # (a) module-default toy shape (M = 16 < 128 -> batch-folded lane-axis path)
    x_small = jax.random.normal(kx, (2, C, 16, 16), dtype=jnp.float32)
    # (b) larger spatial size exercising the NCHW-direct (M >= 128) path
    x_big = jax.random.normal(kx2, (2, C, 64, 64), dtype=jnp.float32)

    for x in (x_small, x_big):
        y = patchconv_forward(x, weight, gamma, beta, running_mean, running_var,
                              patch_size=(kh, kw))
        y = jax.block_until_ready(y)
        ref = _reference(x, weight, gamma, beta, running_mean, running_var, (kh, kw))
        assert y.shape == ref.shape, (y.shape, ref.shape)
        y32 = y.astype(jnp.float32)
        # bf16 patch matrix + bf16 output vs f32 reference (K=48 reduction)
        max_err = float(jnp.max(jnp.abs(y32 - ref)))
        assert jnp.allclose(y32, ref, atol=5e-2, rtol=5e-2), max_err

    print("KERNEL_OK")
</pallas_src>

<mosaic_0001>
module attributes {stable_mosaic.version = 11 : i64} {
  func.func @_patchconv_kernel(%arg0: i32, %arg1: i32, %arg2: memref<16x48xf32, #tpu.memory_space<vmem>>, %arg3: memref<16x1xf32, #tpu.memory_space<vmem>>, %arg4: memref<1x48x32xbf16, #tpu.memory_space<vmem>>, %arg5: memref<1x16x32xbf16, #tpu.memory_space<vmem>>) attributes {dimension_semantics = [#tpu.dimension_semantics<parallel>, #tpu.dimension_semantics<parallel>], iteration_bounds = array<i64: 1, 1>, scalar_prefetch = 0 : i64, scratch_operands = 0 : i64, tpu.core_type = #tpu.core_type<tc>, window_params = [{pipeline_mode = #tpu.pipeline_mode<synchronous>, transform_indices = @transform_0, window_bounds = array<i64: 16, 48>}, {pipeline_mode = #tpu.pipeline_mode<synchronous>, transform_indices = @transform_1, window_bounds = array<i64: 16, 1>}, {transform_indices = @transform_2, window_bounds = array<i64: 1, 48, 32>}, {transform_indices = @transform_3, window_bounds = array<i64: 1, 16, 32>}]} {
    %c0 = arith.constant 0 : index
    %c0_0 = arith.constant 0 : index
    %c0_1 = arith.constant 0 : index
    %0 = vector.load %arg4[%c0, %c0_0, %c0_1] : memref<1x48x32xbf16, #tpu.memory_space<vmem>>, vector<1x48x32xbf16>
    %1 = vector.shape_cast %0 : vector<1x48x32xbf16> to vector<48x32xbf16>
    %2 = arith.extf %1 : vector<48x32xbf16> to vector<48x32xf32>
    %c0_2 = arith.constant 0 : index
    %c0_3 = arith.constant 0 : index
    %3 = vector.load %arg2[%c0_2, %c0_3] : memref<16x48xf32, #tpu.memory_space<vmem>>, vector<16x48xf32>
    %cst = arith.constant dense<0.000000e+00> : vector<16x32xf32>
    %4 = tpu.matmul %3, %2, %cst {dimension_numbers = #tpu.dot_dimension_numbers<[1], [0], [0], [1], [0, 0, 1, 1], [], []>} : vector<16x48xf32>, vector<48x32xf32>, vector<16x32xf32> -> vector<16x32xf32>
    %c0_4 = arith.constant 0 : index
    %c0_5 = arith.constant 0 : index
    %5 = vector.load %arg3[%c0_4, %c0_5] : memref<16x1xf32, #tpu.memory_space<vmem>>, vector<16x1xf32>
    %6 = vector.broadcast %5 : vector<16x1xf32> to vector<16x32xf32>
    %7 = arith.addf %4, %6 : vector<16x32xf32>
    %cst_6 = arith.constant 0.000000e+00 : f32
    %8 = vector.broadcast %cst_6 : f32 to vector<16x32xf32>
    %9 = arith.cmpf oge, %7, %8 : vector<16x32xf32>
    %cst_7 = arith.constant 2.000000e-01 : f32
    %10 = vector.broadcast %cst_7 : f32 to vector<16x32xf32>
    %11 = arith.mulf %10, %7 : vector<16x32xf32>
    %12 = arith.select %9, %7, %11 : vector<16x32xi1>, vector<16x32xf32>
    %13 = arith.truncf %12 : vector<16x32xf32> to vector<16x32xbf16>
    %c0_8 = arith.constant 0 : index
    %c0_9 = arith.constant 0 : index
    %c0_10 = arith.constant 0 : index
    %14 = vector.load %arg5[%c0_8, %c0_9, %c0_10] : memref<1x16x32xbf16, #tpu.memory_space<vmem>>, vector<1x16x32xbf16>
    %15 = vector.shape_cast %14 : vector<1x16x32xbf16> to vector<16x32xbf16>
    %16 = vector.shape_cast %13 : vector<16x32xbf16> to vector<1x16x32xbf16>
    tpu.vector_store %arg5[%c0_8, %c0_9, %c0_10], %16 {strides = array<i32>} : memref<1x16x32xbf16, #tpu.memory_space<vmem>>, vector<1x16x32xbf16>,
    return
  }
  func.func @transform_0(%arg0: i32, %arg1: i32) -> (i32, i32) {
    %c0_i32 = arith.constant 0 : i32
    %c0_i32_0 = arith.constant 0 : i32
    %c0_i32_1 = arith.constant 0 : i32
    return %c0_i32, %c0_i32_0 : i32, i32
  }
  func.func @transform_1(%arg0: i32, %arg1: i32) -> (i32, i32) {
    %c0_i32 = arith.constant 0 : i32
    %c0_i32_0 = arith.constant 0 : i32
    %c0_i32_1 = arith.constant 0 : i32
    return %c0_i32, %c0_i32_0 : i32, i32
  }
  func.func @transform_2(%arg0: i32, %arg1: i32) -> (i32, i32, i32) {
    %c0_i32 = arith.constant 0 : i32
    %c0_i32_0 = arith.constant 0 : i32
    return %arg0, %c0_i32, %arg1 : i32, i32, i32
  }
  func.func @transform_3(%arg0: i32, %arg1: i32) -> (i32, i32, i32) {
    %c0_i32 = arith.constant 0 : i32
    %c0_i32_0 = arith.constant 0 : i32
    return %arg0, %c0_i32, %arg1 : i32, i32, i32
  }
}

</mosaic_0001>

<bundles_post_ra>
// kernel: tpu_custom_call.1
= control target key start
LH: loop header
LB: loop body
LE: loop exit
PB: predicated region body
PF: predicated region fallthrough
CT: control target
= control target key end

     0   :  { %vm41_vm0 = vcmask 392192   ;;  %v240_v3 = vmov 0   ;;  %s299_s0 = inlined_call_operand.vmem [shape: f32[16,48], index: 0, kind: input, shape index: {}]   ;;  %s300_s1 = inlined_call_operand.vmem [shape: f32[16,1], index: 1, kind: input, shape index: {}]   ;;  %s301_s2 = inlined_call_operand.vmem [shape: bf16[1,48,32], index: 2, kind: input, shape index: {}]   ;;  %s302_s3 = inlined_call_operand.hbm [shape: bf16[1,16,32], index: 3, kind: output, shape index: {}]  }
   0x1   :  { %v163_v0 = vld [vmem:[%s301_s2] sm:$0xff]   ;;  %v174_v1 = vld [vmem:[%s301_s2 + $0x8] sm:$0xff]   ;;  %215 = vset.pattern.permute.xlu0 %v240_v3 }
   0x2   :  { %200 = vmatprep.subr.bf16.mxu0 %v163_v0  ;;  %v27_v2 = vld [vmem:[%s299_s0] sm:$0xff] }
   0x3   :  { %v29_v4 = vld [vmem:[%s300_s1] sm:$0xff]  ;;  %202 = vmatpush3.bf16.msra.mxu0 %v163_v0  ;;  %196 = vmatprep.mubr.msk.f32.mxu0 %vm41_vm0, %v27_v2 }
   0x4   :  { %8 = vsyncpa [#allocation3], 0  ;;  %204 = vmatprep.subr.bf16.mxu0 %v174_v1  ;;  %33 = vperm.xlu0 %215, %v29_v4   ;;  %v175_v5 = vld [vmem:[%s301_s2 + $0x10] sm:$0xff]   ;;  %v30_v6 = vld [vmem:[%s300_s1 + $0x8] sm:$0xff]  ;;  %s241_s2 = smov [#allocation2]   ;;  %vm137_vm3 = vcmask 257024  }
   0x5   :  { %v28_v7 = vld [vmem:[%s299_s0 + $0x8] sm:$0xff]  ;;  %s145_s1 = sshll.u32 %s241_s2, 4  ;;  %s146_s1 = int_to_ptr.vmem [resolvable:$true] %s145_s1 }
   0x6   :  { %s216_s0 = scalar_lea.vmem %s146_s1, 128  ;;  %p221_p1 = scmp.lt.s32.totalorder %s146_s1, %s146_s1 }
   0x7   :  { %206 = vmatpush3.bf16.msra.mxu0 %v174_v1  ;;  %p217_p0 = scmp.ne.s32.totalorder %s146_s1, %s216_s0  ;;  %p222_p2 = scmp.lt.s32.totalorder %s216_s0, %s216_s0 }
   0x8   :  { %208 = vmatprep.subr.bf16.mxu0 %v175_v5  ;;  %38 = vperm.xlu0 %215, %v30_v6  }
   0x9   :  { %p223_p3 = por %p222_p2, %p221_p1 }
   0xb   :  { %210 = vmatpush3.bf16.msra.mxu0 %v175_v5  ;;  %p224_p4 = pnand %p223_p3, %p217_p0 }
   0xe   :  { %197 = vmatmul.mubr.msk.f32.vlgmr.msra.gmra.mrb[0].mxu0 %vm41_vm0, %v28_v7 }
  0x83   :  { %v34_v8 = vpop.permute.xlu0 %33 }
  0x87   :  { %v39_v9 = vpop.permute.xlu0 %38 }
  0xe1   :  { %v198_v10 = vpop.f32.mrb[0].mxu0 }
  0xe2   :  { %v120_v11 = vadd.f32 %v198_v10, %v39_v9  ;;  %v114_v12 = vpop.f32.mrb[1].mxu0 }
  0xe3   :  { %v115_v13 = vadd.f32 %v114_v12, %v34_v8 }
  0xe4   :  { %vm124_vm1 = vcmp.ge.f32.partialorder %v120_v11, 0.0  ;;  %v126_v14 = vmul.f32 0.2, %v120_v11 }
  0xe5   :  { %vm123_vm2 = vcmp.ge.f32.partialorder %v115_v13, 0.0  ;;  %v125_v15 = vmul.f32 0.2, %v115_v13 }
  0xe6   :  { %v128_v16 = vsel %vm124_vm1, %v120_v11, %v126_v14 }
  0xe7   :  { %v161_v17 = vpack.c.bf16 %v128_v16, %v128_v16  ;;  %v127_v18 = vsel %vm123_vm2, %v115_v13, %v125_v15 }
  0xe8   :  { %v160_v19 = vpack.c.bf16 %v127_v18, %v127_v18 }
  0xe9   :  { %139 = vst.msk [vmem:[#allocation2 + $0x4] sm:$0xf] %vm137_vm3, %v161_v17 }
  0xea   :  { %138 = vst.msk [vmem:[#allocation2] sm:$0xf] %vm137_vm3, %v160_v19 }
  0xeb   :  { %227 = shalt.err (!%p224_p4)
}
  0xec   :  { %s228_s28 = scalar_lea.hbm %s302_s3, 128 }
  0xed   :  { %p229_p5 = scmp.ne.s32.totalorder %s302_s3, %s228_s28  ;;  %p232_p6 = scmp.lt.u32.totalorder %s228_s28, %s302_s3 }
  0xef   :  { %p234_p7 = pnand %p232_p6, %p229_p5 }
  0xf1   :  { %237 = shalt.err (!%p234_p7)
}
  0xf2   :  { %s242_s6 = smov 64   ;;  %s243_s7 = smov 4  }
  0xf3   :  { %151 = dma.vmem_to_hbm [thread:$0]  %s146_s1, 128, %s302_s3, [#allocation3], %s242_s6, %s242_s6, %s243_s7  }
  0xf4   :  { %238 = dma.done.wait [#allocation3], 128  }
  0xf5   :  { %239 = vsyncadd [#allocation3], 4294967168 }
  0xf6   :  { %155 = vsyncpa [#allocation3], 1 }

</bundles_post_ra>
